<compile_context>
chip_gen: v7x
topology: tpu7x:2x2x1
jax: 0.10.0
libtpu: 0.0.40
codegen_flags: <defaults>
</compile_context>

<pallas_src>
import functools

import jax
import jax.numpy as jnp
from jax import lax
from jax.experimental import pallas as pl
from jax.experimental.pallas import tpu as pltpu

_LANE = 128


def _round_up(x, m):
    return ((x + m - 1) // m) * m


def _pad2(a, shape):
    return jnp.pad(a, ((0, shape[0] - a.shape[0]), (0, shape[1] - a.shape[1])))


def _embedding_mdl_kernel(idx_ref, table_ref, w1_ref, w2_ref, out_ref, *, n, tb):
    # idx_ref  : (TM, 1)         int32 node indices, TM = tb * n flattened rows
    # table_ref: (V_pad, D_pad)  frozen embedding table (zero lane-padded)
    # w1_ref   : (H_pad, D_pad)  fc0 weight, torch (out, in) layout
    # w2_ref   : (P_pad, H_pad)  U   weight, torch (out, in) layout
    # out_ref  : (TB, LANE_OUT)  lane j of batch row b holds -dist(e[b,j], e[b,0])
    tm = tb * n
    v_pad = table_ref.shape[0]
    p_pad = w2_ref.shape[0]
    lane = out_ref.shape[-1]

    # --- fused embedding gather: one_hot(indices) @ table on the MXU --------
    idx = idx_ref[...]                                            # (TM, 1) int32
    cols = lax.broadcasted_iota(jnp.int32, (tm, v_pad), 1)
    onehot = (cols == idx).astype(table_ref.dtype)                # (TM, V_pad)
    x = jnp.dot(onehot, table_ref[...],
                preferred_element_type=jnp.float32)               # (TM, D_pad) f32

    # --- h = tanh(x @ W_fc0^T): transposed-RHS dot, torch weight layout -----
    h = jnp.tanh(lax.dot_general(
        x.astype(w1_ref.dtype), w1_ref[...],
        dimension_numbers=(((1,), (1,)), ((), ())),
        preferred_element_type=jnp.float32))                      # (TM, H_pad) f32

    # --- e = h @ W_U^T -------------------------------------------------------
    e = lax.dot_general(
        h.astype(w2_ref.dtype), w2_ref[...],
        dimension_numbers=(((1,), (1,)), ((), ())),
        preferred_element_type=jnp.float32)                       # (TM, P_pad) f32

    # --- -||e[b, i] - e[b, 0]||^2 per row ------------------------------------
    e3 = e.reshape(tb, n, p_pad)                                  # split leading dim only
    diff = e3 - e3[:, 0:1, :]                                     # broadcast source row
    neg = -jnp.sum(diff * diff, axis=-1)                          # (tb, n); col 0 == 0

    if n < lane:                                                  # static Python branch
        out_ref[...] = jnp.zeros_like(out_ref)
    out_ref[:, 0:n] = neg.astype(out_ref.dtype)


def prepare_embedding_mdl_params(data_vectors, w_fc0, w_u,
                                 matmul_dtype=jnp.float32):
    """One-time parameter prep (call once, outside the per-step path).

    data_vectors: (V, D) frozen embedding table.
    w_fc0:        (H, D) torch-layout weight of Linear(D->H, bias=False).
    w_u:          (P, H) torch-layout weight of Linear(H->P, bias=False).
    matmul_dtype: jnp.float32 (exact) or jnp.bfloat16 (MXU/DMA win on v6e/v7x).
    """
    v, d = data_vectors.shape
    h = w_fc0.shape[0]
    p = w_u.shape[0]
    table = _pad2(data_vectors.astype(jnp.float32),
                  (_round_up(v, 8), _round_up(d, _LANE)))
    w1 = _pad2(w_fc0.astype(jnp.float32),
               (_round_up(h, _LANE), _round_up(d, _LANE)))
    w2 = _pad2(w_u.astype(jnp.float32),
               (_round_up(p, _LANE), _round_up(h, _LANE)))
    return (table.astype(matmul_dtype),
            w1.astype(matmul_dtype),
            w2.astype(matmul_dtype))


def embedding_mdl_forward(inputs, table, w1, w2, *, batches_per_tile=None):
    """inputs: (B, N) int32 node indices (column 0 = source node).
    table/w1/w2: outputs of prepare_embedding_mdl_params.
    Returns (B, N-1) float32 == -squared-distance, matching the PyTorch forward."""
    b, n = inputs.shape
    assert n >= 2, "need at least one object row besides the source node"
    lane_out = _round_up(n, _LANE)

    # Batch rows per grid step: ~512 flattened rows, kept a multiple of 8 so the
    # (TM, 1) index block and the (TB, lane_out) output block satisfy the
    # (8, 128)-or-full-dim constraint.  Otherwise fall back to a single step.
    if batches_per_tile is None:
        tb = max(8, ((512 // n) // 8) * 8)
    else:
        tb = batches_per_tile
    if tb >= b or tb % 8 != 0:
        tb = b                      # single step: blocks == full arrays, no (8,*) gate
    b_pad = _round_up(b, tb)
    tm = tb * n

    idx = inputs.reshape(b * n, 1).astype(jnp.int32)
    if b_pad != b:
        idx = jnp.pad(idx, ((0, (b_pad - b) * n), (0, 0)))

    kernel = functools.partial(_embedding_mdl_kernel, n=n, tb=tb)
    out_slab = pl.pallas_call(
        kernel,
        out_shape=jax.ShapeDtypeStruct((b_pad, lane_out), jnp.float32),
        grid_spec=pltpu.PrefetchScalarGridSpec(
            num_scalar_prefetch=0,
            grid=(b_pad // tb,),
            in_specs=[
                pl.BlockSpec((tm, 1), lambda t: (t, 0)),
                # Constant index maps keep table / weights VMEM-resident
                # across all grid steps (no per-step re-DMA).
                pl.BlockSpec(table.shape, lambda t: (0, 0)),
                pl.BlockSpec(w1.shape, lambda t: (0, 0)),
                pl.BlockSpec(w2.shape, lambda t: (0, 0)),
            ],
            out_specs=pl.BlockSpec((tb, lane_out), lambda t: (t, 0)),
        ),
        compiler_params=pltpu.CompilerParams(
            dimension_semantics=("parallel",)),
    )(idx, table, w1, w2)

    # Lane j of batch row b holds -dist(e[b, j], e[b, 0]); drop lane 0 (source
    # vs source) and any padded lanes / padded batch rows.
    return out_slab[:b, 1:n]


def _reference_forward(inputs, data_vectors, w_fc0, w_u):
    x = data_vectors[inputs]                          # (B, N, D)
    h = jnp.tanh(jnp.einsum("bnd,hd->bnh", x, w_fc0,
                            precision=lax.Precision.HIGHEST))
    e = jnp.einsum("bnh,ph->bnp", h, w_u, precision=lax.Precision.HIGHEST)
    s = e[:, 0:1, :]
    o = e[:, 1:, :]
    dists = jnp.sum((s - o) ** 2, axis=-1)
    return -dists


if __name__ == "__main__":
    # Small shapes consistent with the module's opt dict.
    total_node_num = 16     # opt['total_node_num'] == data_vectors.shape[0]
    D = 32                  # data_vectors.shape[1]
    hidden_size = 32        # opt['hidden_size']  (hidden_layer_num == 1)
    parameter_num = 16      # opt['parameter_num']
    B, N = 2, 8             # batch of index tuples (1 source + 7 objects)

    key = jax.random.PRNGKey(0)
    k_dv, k_w1, k_w2, k_idx = jax.random.split(key, 4)

    data_vectors = jax.random.normal(k_dv, (total_node_num, D), jnp.float32)

    # Deterministic xavier_uniform-like init (gain=4), matching initialization().
    def xavier_uniform(k, shape, gain=4.0):
        fan_out, fan_in = shape
        bound = gain * jnp.sqrt(6.0 / (fan_in + fan_out))
        return jax.random.uniform(k, shape, jnp.float32, -bound, bound)

    w_fc0 = xavier_uniform(k_w1, (hidden_size, D))             # Linear(D->H).weight
    w_u = xavier_uniform(k_w2, (parameter_num, hidden_size))   # Linear(H->P).weight

    inputs = jax.random.randint(k_idx, (B, N), 0, total_node_num, jnp.int32)

    # One-time prep (lane-padding / optional bf16); hoisted out of the hot path.
    # Use matmul_dtype=jnp.bfloat16 on v6e/v7x for the 2x MXU / DMA win.
    table, w1, w2 = prepare_embedding_mdl_params(data_vectors, w_fc0, w_u)

    out = embedding_mdl_forward(inputs, table, w1, w2)
    out = jax.block_until_ready(out)

    ref = _reference_forward(inputs, data_vectors, w_fc0, w_u)
    assert out.shape == (B, N - 1)
    assert jnp.allclose(out, ref, atol=5e-4, rtol=5e-4), (
        "max abs diff = %g" % float(jnp.max(jnp.abs(out - ref))))

    print("KERNEL_OK")
</pallas_src>

<mosaic_0001>
module attributes {stable_mosaic.version = 11 : i64} {
  func.func @_embedding_mdl_kernel(%arg0: i32, %arg1: memref<16x1xi32, #tpu.memory_space<vmem>>, %arg2: memref<16x128xf32, #tpu.memory_space<vmem>>, %arg3: memref<128x128xf32, #tpu.memory_space<vmem>>, %arg4: memref<128x128xf32, #tpu.memory_space<vmem>>, %arg5: memref<2x128xf32, #tpu.memory_space<vmem>>) attributes {dimension_semantics = [#tpu.dimension_semantics<parallel>], iteration_bounds = array<i64: 1>, scalar_prefetch = 0 : i64, scratch_operands = 0 : i64, tpu.core_type = #tpu.core_type<tc>, window_params = [{transform_indices = @transform_0, window_bounds = array<i64: 16, 1>}, {pipeline_mode = #tpu.pipeline_mode<synchronous>, transform_indices = @transform_1, window_bounds = array<i64: 16, 128>}, {pipeline_mode = #tpu.pipeline_mode<synchronous>, transform_indices = @transform_2, window_bounds = array<i64: 128, 128>}, {pipeline_mode = #tpu.pipeline_mode<synchronous>, transform_indices = @transform_3, window_bounds = array<i64: 128, 128>}, {transform_indices = @transform_4, window_bounds = array<i64: 2, 128>}]} {
    %c0 = arith.constant 0 : index
    %c0_0 = arith.constant 0 : index
    %0 = vector.load %arg1[%c0, %c0_0] : memref<16x1xi32, #tpu.memory_space<vmem>>, vector<16x1xi32>
    %1 = tpu.iota {dimensions = array<i32: 1>} : vector<16x16xi32>
    %2 = vector.broadcast %0 : vector<16x1xi32> to vector<16x16xi32>
    %3 = arith.cmpi eq, %1, %2 : vector<16x16xi32>
    %4 = arith.extui %3 : vector<16x16xi1> to vector<16x16xi32>
    %5 = arith.sitofp %4 : vector<16x16xi32> to vector<16x16xf32>
    %c0_1 = arith.constant 0 : index
    %c0_2 = arith.constant 0 : index
    %6 = vector.load %arg2[%c0_1, %c0_2] : memref<16x128xf32, #tpu.memory_space<vmem>>, vector<16x128xf32>
    %cst = arith.constant dense<0.000000e+00> : vector<16x128xf32>
    %7 = tpu.matmul %5, %6, %cst {dimension_numbers = #tpu.dot_dimension_numbers<[1], [0], [0], [1], [0, 0, 1, 1], [], []>} : vector<16x16xf32>, vector<16x128xf32>, vector<16x128xf32> -> vector<16x128xf32>
    %c0_3 = arith.constant 0 : index
    %c0_4 = arith.constant 0 : index
    %8 = vector.load %arg3[%c0_3, %c0_4] : memref<128x128xf32, #tpu.memory_space<vmem>>, vector<128x128xf32>
    %cst_5 = arith.constant dense<0.000000e+00> : vector<16x128xf32>
    %9 = tpu.matmul %7, %8, %cst_5 {dimension_numbers = #tpu.dot_dimension_numbers<[1], [1], [0], [0], [0, 0, 1, 0], [], []>} : vector<16x128xf32>, vector<128x128xf32>, vector<16x128xf32> -> vector<16x128xf32>
    %10 = math.tanh %9 : vector<16x128xf32>
    %c0_6 = arith.constant 0 : index
    %c0_7 = arith.constant 0 : index
    %11 = vector.load %arg4[%c0_6, %c0_7] : memref<128x128xf32, #tpu.memory_space<vmem>>, vector<128x128xf32>
    %cst_8 = arith.constant dense<0.000000e+00> : vector<16x128xf32>
    %12 = tpu.matmul %10, %11, %cst_8 {dimension_numbers = #tpu.dot_dimension_numbers<[1], [1], [0], [0], [0, 0, 1, 0], [], []>} : vector<16x128xf32>, vector<128x128xf32>, vector<16x128xf32> -> vector<16x128xf32>
    %13 = vector.shape_cast %12 : vector<16x128xf32> to vector<2x8x128xf32>
    %14 = vector.extract_strided_slice %13 {offsets = [0, 0, 0], sizes = [2, 1, 128], strides = [1, 1, 1]} : vector<2x8x128xf32> to vector<2x1x128xf32>
    %15 = vector.broadcast %14 : vector<2x1x128xf32> to vector<2x8x128xf32>
    %16 = arith.subf %13, %15 : vector<2x8x128xf32>
    %17 = arith.mulf %16, %16 : vector<2x8x128xf32>
    %cst_9 = arith.constant dense<0.000000e+00> : vector<2x8xf32>
    %18 = vector.multi_reduction <add>, %17, %cst_9 [2] : vector<2x8x128xf32> to vector<2x8xf32>
    %cst_10 = arith.constant 0.000000e+00 : f32
    %19 = vector.broadcast %cst_10 : f32 to vector<2x8xf32>
    %20 = arith.subf %19, %18 : vector<2x8xf32>
    %cst_11 = arith.constant 0.000000e+00 : f32
    %21 = vector.broadcast %cst_11 : f32 to vector<2x128xf32>
    %c0_12 = arith.constant 0 : index
    %c0_13 = arith.constant 0 : index
    %22 = vector.load %arg5[%c0_12, %c0_13] : memref<2x128xf32, #tpu.memory_space<vmem>>, vector<2x128xf32>
    tpu.vector_store %arg5[%c0_12, %c0_13], %21 {strides = array<i32>} : memref<2x128xf32, #tpu.memory_space<vmem>>, vector<2x128xf32>,
    %c0_14 = arith.constant 0 : index
    %c0_15 = arith.constant 0 : index
    %23 = vector.load %arg5[%c0_14, %c0_15] : memref<2x128xf32, #tpu.memory_space<vmem>>, vector<2x8xf32>
    tpu.vector_store %arg5[%c0_14, %c0_15], %20 {strides = array<i32>} : memref<2x128xf32, #tpu.memory_space<vmem>>, vector<2x8xf32>,
    return
  }
  func.func @transform_0(%arg0: i32) -> (i32, i32) {
    %c0_i32 = arith.constant 0 : i32
    %c0_i32_0 = arith.constant 0 : i32
    return %arg0, %c0_i32 : i32, i32
  }
  func.func @transform_1(%arg0: i32) -> (i32, i32) {
    %c0_i32 = arith.constant 0 : i32
    %c0_i32_0 = arith.constant 0 : i32
    %c0_i32_1 = arith.constant 0 : i32
    return %c0_i32, %c0_i32_0 : i32, i32
  }
  func.func @transform_2(%arg0: i32) -> (i32, i32) {
    %c0_i32 = arith.constant 0 : i32
    %c0_i32_0 = arith.constant 0 : i32
    %c0_i32_1 = arith.constant 0 : i32
    return %c0_i32, %c0_i32_0 : i32, i32
  }
  func.func @transform_3(%arg0: i32) -> (i32, i32) {
    %c0_i32 = arith.constant 0 : i32
    %c0_i32_0 = arith.constant 0 : i32
    %c0_i32_1 = arith.constant 0 : i32
    return %c0_i32, %c0_i32_0 : i32, i32
  }
  func.func @transform_4(%arg0: i32) -> (i32, i32) {
    %c0_i32 = arith.constant 0 : i32
    %c0_i32_0 = arith.constant 0 : i32
    return %arg0, %c0_i32 : i32, i32
  }
}

</mosaic_0001>

<bundles_post_ra>
// kernel: tpu_custom_call.1
= control target key start
LH: loop header
LB: loop body
LE: loop exit
PB: predicated region body
PF: predicated region fallthrough
CT: control target
= control target key end

     0   :  { %9 = vsyncpa [#allocation3], 0  ;;  %s738_s0 = inlined_call_operand.vmem [shape: s32[16,1], index: 0, kind: input, shape index: {}]   ;;  %s739_s1 = inlined_call_operand.vmem [shape: f32[16,128], index: 1, kind: input, shape index: {}]   ;;  %s740_s2 = inlined_call_operand.hbm [shape: f32[128,128], index: 2, kind: input, shape index: {}]   ;;  %s741_s3 = inlined_call_operand.hbm [shape: f32[128,128], index: 3, kind: input, shape index: {}]   ;;  %s742_s4 = inlined_call_operand.hbm [shape: f32[2,128], index: 4, kind: output, shape index: {}]  }
   0x1   :  { %10 = vsyncpa [#allocation6], 0 }
   0x2   :  { %11 = vsyncpa [#allocation4], 0  ;;  %s653_s15 = smov [#allocation2]   ;;  %s581_s19 = scalar_lea.hbm %s740_s2, 2048 }
   0x3   :  { %s21_s16 = sshll.u32 %s653_s15, 4  ;;  %p582_p0 = scmp.ne.s32.totalorder %s740_s2, %s581_s19  ;;  %s22_s16 = int_to_ptr.vmem [resolvable:$true] %s21_s16 }
   0x4   :  { %p585_p1 = scmp.lt.u32.totalorder %s581_s19, %s740_s2 }
   0x6   :  { %p587_p2 = pnand %p585_p1, %p582_p0 }
   0x8   :  { %590 = shalt.err (!%p587_p2)
}
   0x9   :  { %s591_s24 = scalar_lea.vmem %s22_s16, 2048  ;;  %p596_p4 = scmp.lt.s32.totalorder %s22_s16, %s22_s16 }
   0xa   :  { %p592_p3 = scmp.ne.s32.totalorder %s22_s16, %s591_s24  ;;  %p597_p5 = scmp.lt.s32.totalorder %s591_s24, %s591_s24 }
   0xc   :  { %p598_p6 = por %p597_p5, %p596_p4 }
   0xe   :  { %p599_p7 = pnand %p598_p6, %p592_p3 }
  0x10   :  { %602 = shalt.err (!%p599_p7)
}
  0x11   :  { %s654_s25 = smov 128   ;;  %s655_s26 = smov 8  }
  0x12   :  { %27 = dma.hbm_to_vmem [thread:$0]  %s740_s2, 2048, %s22_s16, [#allocation3], %s654_s25, %s654_s25, %s655_s26  }
  0x13   :  { %s656_s29 = smov [#allocation5]   ;;  %s603_s7 = scalar_lea.hbm %s741_s3, 2048 }
  0x14   :  { %s33_s30 = sshll.u32 %s656_s29, 4  ;;  %p604_p8 = scmp.ne.s32.totalorder %s741_s3, %s603_s7  ;;  %s34_s30 = int_to_ptr.vmem [resolvable:$true] %s33_s30 }
  0x15   :  { %p607_p9 = scmp.lt.u32.totalorder %s603_s7, %s741_s3 }
  0x17   :  { %p609_p10 = pnand %p607_p9, %p604_p8 }
  0x19   :  { %612 = shalt.err (!%p609_p10)
}
  0x1a   :  { %s613_s12 = scalar_lea.vmem %s34_s30, 2048  ;;  %p618_p12 = scmp.lt.s32.totalorder %s34_s30, %s34_s30 }
  0x1b   :  { %p614_p11 = scmp.ne.s32.totalorder %s34_s30, %s613_s12  ;;  %p619_p13 = scmp.lt.s32.totalorder %s613_s12, %s613_s12 }
  0x1d   :  { %p620_p0 = por %p619_p13, %p618_p12 }
  0x1f   :  { %p621_p1 = pnand %p620_p0, %p614_p11 }
  0x21   :  { %624 = shalt.err (!%p621_p1)
}
  0x22   :  { %39 = dma.hbm_to_vmem [thread:$0]  %s741_s3, 2048, %s34_s30, [#allocation6], %s654_s25, %s654_s25, %s655_s26  }
  0x23   :  { %647 = dma.done.wait [#allocation3], 2048  }
  0x24   :  { %648 = vsyncadd [#allocation3], 4294965248 }
  0x25   :  { %649 = dma.done.wait [#allocation6], 2048  }
  0x26   :  { %650 = vsyncadd [#allocation6], 4294965248  ;;  %v657_v0 = vmov 0   ;;  %v46_v1 = vld [vmem:[%s738_s0] sm:$0xff]  ;;  %v63_v3 = vld [vmem:[%s739_s1 + $0x8] sm:$0xff]  ;;  %v658_v6 = vmov 0.0   ;;  %v48_v31 = vlaneseq }
  0x27   :  { %576 = vset.pattern.permute.xlu0 %v657_v0  ;;  %v62_v2 = vld [vmem:[%s739_s1] sm:$0xff]  ;;  %v47_v4 = vld [vmem:[%s738_s0 + $0x8] sm:$0xff]  ;;  %348 = vst [vmem:[#allocation7] sm:$0x3] %v658_v6  ;;  %v148_v9 = vld [vmem:[#allocation2 + $0x10] sm:$0xff]  ;;  %vm64_vm0 = vcmask 130048  }
  0x28   :  { %51 = vperm.xlu0 %576, %v46_v1   ;;  %v501_v5 = vpack.c.bf16 %v63_v3, %v62_v2  ;;  %v146_v7 = vld [vmem:[#allocation2] sm:$0xff]  ;;  %v147_v8 = vld [vmem:[#allocation2 + $0x8] sm:$0xff]  ;;  %v149_v11 = vld [vmem:[#allocation2 + $0x18] sm:$0xff]  ;;  %v721_v32 = vand.u32 127, %v48_v31  ;;  %v331_v3 = vshrl.u32 %v48_v31, 7  ;;  %s659_s0 = smov [#allocation7]  }
  0x29   :  { %v505_v10 = vpack.c.bf16 %v147_v8, %v146_v7  ;;  %v509_v12 = vpack.c.bf16 %v149_v11, %v148_v9  ;;  %v150_v13 = vld [vmem:[#allocation2 + $0x20] sm:$0xff]  ;;  %v151_v14 = vld [vmem:[#allocation2 + $0x28] sm:$0xff]  ;;  %v152_v16 = vld [vmem:[#allocation2 + $0x30] sm:$0xff]  ;;  %s370_s1 = sshll.u32 %s659_s0, 4  ;;  %vm359_vm3 = vcmask 1041409   ;;  %vm362_vm4 = vcmask 58368   ;;  %s371_s1 = int_to_ptr.vmem [resolvable:$true] %s370_s1 }
  0x2a   :  { %502 = vmatprep.subr.bf16.mxu0 %v501_v5  ;;  %v513_v15 = vpack.c.bf16 %v151_v14, %v150_v13  ;;  %v153_v17 = vld [vmem:[#allocation2 + $0x38] sm:$0xff]  ;;  %v154_v19 = vld [vmem:[#allocation2 + $0x40] sm:$0xff]  ;;  %v155_v20 = vld [vmem:[#allocation2 + $0x48] sm:$0xff]  ;;  %v353_v14 = vsub.s32 %v721_v32, %v331_v3  ;;  %s625_s21 = scalar_lea.vmem %s371_s1, 32  ;;  %p630_p3 = scmp.lt.s32.totalorder %s371_s1, %s371_s1 }
  0x2b   :  { %504 = vmatpush3.bf16.msra.mxu0 %v501_v5  ;;  %506 = vmatprep.subr.bf16.mxu1 %v505_v10  ;;  %v517_v18 = vpack.c.bf16 %v153_v17, %v152_v16  ;;  %v521_v21 = vpack.c.bf16 %v155_v20, %v154_v19  ;;  %v156_v22 = vld [vmem:[#allocation2 + $0x50] sm:$0xff]  ;;  %v157_v23 = vld [vmem:[#allocation2 + $0x58] sm:$0xff]  ;;  %v158_v25 = vld [vmem:[#allocation2 + $0x60] sm:$0xff]  ;;  %p626_p2 = scmp.ne.s32.totalorder %s371_s1, %s625_s21  ;;  %p631_p4 = scmp.lt.s32.totalorder %s625_s21, %s625_s21 }
  0x2c   :  { %54 = vperm.xlu0 %576, %v47_v4   ;;  %508 = vmatpush3.bf16.xpose.msra.mxu1 %v505_v10  ;;  %v525_v24 = vpack.c.bf16 %v157_v23, %v156_v22  ;;  %v159_v26 = vld [vmem:[#allocation2 + $0x68] sm:$0xff]  ;;  %v160_v28 = vld [vmem:[#allocation2 + $0x70] sm:$0xff]  ;;  %v161_v29 = vld [vmem:[#allocation2 + $0x78] sm:$0xff]  ;;  %v332_v4 = vsub.s32 0, %v331_v3 }
  0x2d   :  { %510 = vmatprep.subr.bf16.mxu1 %v509_v12  ;;  %v529_v27 = vpack.c.bf16 %v159_v26, %v158_v25  ;;  %v533_v30 = vpack.c.bf16 %v161_v29, %v160_v28  ;;  %v239_v37 = vld [vmem:[#allocation5] sm:$0xff]  ;;  %v240_v38 = vld [vmem:[#allocation5 + $0x8] sm:$0xff]  ;;  %v241_v39 = vld [vmem:[#allocation5 + $0x10] sm:$0xff]  ;;  %p632_p5 = por %p631_p4, %p630_p3 }
  0x2e   :  { %v537_v40 = vpack.c.bf16 %v240_v38, %v239_v37  ;;  %v242_v41 = vld [vmem:[#allocation5 + $0x18] sm:$0xff]  ;;  %v243_v43 = vld [vmem:[#allocation5 + $0x20] sm:$0xff]  ;;  %v244_v44 = vld [vmem:[#allocation5 + $0x28] sm:$0xff] }
  0x2f   :  { %v541_v42 = vpack.c.bf16 %v242_v41, %v241_v39  ;;  %v545_v45 = vpack.c.bf16 %v244_v44, %v243_v43  ;;  %v245_v46 = vld [vmem:[#allocation5 + $0x30] sm:$0xff]  ;;  %v246_v47 = vld [vmem:[#allocation5 + $0x38] sm:$0xff]  ;;  %v247_v49 = vld [vmem:[#allocation5 + $0x40] sm:$0xff]  ;;  %p633_p6 = pnand %p632_p5, %p626_p2 }
  0x30   :  { %538 = vmatprep.subr.bf16.mxu0 %v537_v40  ;;  %v549_v48 = vpack.c.bf16 %v246_v47, %v245_v46  ;;  %v248_v50 = vld [vmem:[#allocation5 + $0x48] sm:$0xff]  ;;  %v249_v52 = vld [vmem:[#allocation5 + $0x50] sm:$0xff]  ;;  %v250_v53 = vld [vmem:[#allocation5 + $0x58] sm:$0xff] }
  0x31   :  { %v553_v51 = vpack.c.bf16 %v248_v50, %v247_v49  ;;  %v557_v54 = vpack.c.bf16 %v250_v53, %v249_v52  ;;  %v251_v55 = vld [vmem:[#allocation5 + $0x60] sm:$0xff]  ;;  %v252_v56 = vld [vmem:[#allocation5 + $0x68] sm:$0xff]  ;;  %v253_v60 = vld [vmem:[#allocation5 + $0x70] sm:$0xff] }
  0x32   :  { %v561_v57 = vpack.c.bf16 %v252_v56, %v251_v55  ;;  %v254_v61 = vld [vmem:[#allocation5 + $0x78] sm:$0xff] }
  0x33   :  { %v565_v62 = vpack.c.bf16 %v254_v61, %v253_v60 }
  0x34   :  { %512 = vmatpush3.bf16.xpose.msra.mxu1 %v509_v12 }
  0x35   :  { %514 = vmatprep.subr.bf16.mxu1 %v513_v15 }
  0x3c   :  { %516 = vmatpush3.bf16.xpose.msra.mxu1 %v513_v15 }
  0x3d   :  { %518 = vmatprep.subr.bf16.mxu1 %v517_v18 }
  0x44   :  { %520 = vmatpush3.bf16.xpose.msra.mxu1 %v517_v18 }
  0x45   :  { %522 = vmatprep.subr.bf16.mxu1 %v521_v21 }
  0x4c   :  { %524 = vmatpush3.bf16.xpose.msra.mxu1 %v521_v21 }
  0x4d   :  { %526 = vmatprep.subr.bf16.mxu1 %v525_v24 }
  0x54   :  { %528 = vmatpush3.bf16.xpose.msra.mxu1 %v525_v24 }
  0x55   :  { %530 = vmatprep.subr.bf16.mxu1 %v529_v27 }
  0x5c   :  { %532 = vmatpush3.bf16.xpose.msra.mxu1 %v529_v27 }
  0x5d   :  { %534 = vmatprep.subr.bf16.mxu1 %v533_v30 }
  0x64   :  { %536 = vmatpush3.bf16.xpose.msra.mxu1 %v533_v30 }
  0xa7   :  { %v52_v33 = vpop.permute.xlu0 %51 }
  0xa8   :  { %vm56_vm1 = vcmp.eq.s32.totalorder %v721_v32, %v52_v33 }
  0xa9   :  { %v380_v34 = vsel %vm56_vm1, 1.0, %v658_v6 }
  0xaa   :  { %428 = vmatprep.mubr.msk.f32.mxu0 %vm64_vm0, %v380_v34 }
  0xab   :  { %v55_v35 = vpop.permute.xlu0 %54 }
  0xac   :  { %vm57_vm2 = vcmp.eq.s32.totalorder %v721_v32, %v55_v35 }
  0xad   :  { %v381_v36 = vsel %vm57_vm2, 1.0, %v658_v6 }
  0xae   :  { %429 = vmatmul.mubr.msk.f32.vlgmr.msra.gmra.mrb[0].mxu0 %vm64_vm0, %v381_v36 }
  0xaf   :  { %540 = vmatpush3.bf16.xpose.msra.mxu0 %v537_v40 }
  0xb0   :  { %542 = vmatprep.subr.bf16.mxu0 %v541_v42 }
  0xb7   :  { %544 = vmatpush3.bf16.xpose.msra.mxu0 %v541_v42 }
  0xb8   :  { %546 = vmatprep.subr.bf16.mxu0 %v545_v45 }
  0xbf   :  { %548 = vmatpush3.bf16.xpose.msra.mxu0 %v545_v45 }
  0xc0   :  { %550 = vmatprep.subr.bf16.mxu0 %v549_v48 }
  0xc7   :  { %552 = vmatpush3.bf16.xpose.msra.mxu0 %v549_v48 }
  0xc8   :  { %554 = vmatprep.subr.bf16.mxu0 %v553_v51 }
  0xcf   :  { %556 = vmatpush3.bf16.xpose.msra.mxu0 %v553_v51 }
  0xd0   :  { %558 = vmatprep.subr.bf16.mxu0 %v557_v54 }
  0xd7   :  { %560 = vmatpush3.bf16.xpose.msra.mxu0 %v557_v54 }
  0xd8   :  { %562 = vmatprep.subr.bf16.mxu0 %v561_v57 }
  0xdf   :  { %564 = vmatpush3.bf16.xpose.msra.mxu0 %v561_v57 }
  0xe0   :  { %566 = vmatprep.subr.bf16.mxu0 %v565_v62 }
  0xe7   :  { %568 = vmatpush3.bf16.xpose.msra.mxu0 %v565_v62 }
 0x181   :  { %v430_v58 = vpop.f32.mrb[0].mxu0 }
 0x182   :  { %v137_v59 = vpop.f32.mrb[1].mxu0 }
 0x183   :  { %463 = vmatprep.mubr.f32.mxu1 %v137_v59 }
 0x184   :  { %464 = vmatmul.mubr.f32.vlgmr.msra.gmra.mrb[0].mxu1 %v430_v58 }
 0x257   :  { %v465_v63 = vpop.f32.mrb[0].mxu1 }
 0x258   :  { %v228_v0 = vpop.f32.mrb[1].mxu1 }
 0x259   :  { %577 = vtanh.f32 %v228_v0 }
 0x25a   :  { %579 = vtanh.f32 %v465_v63 }
 0x263   :  { %v578_v1 = vpop.eup %577 }
 0x264   :  { %v580_v2 = vpop.eup %579  ;;  %498 = vmatprep.mubr.f32.mxu0 %v578_v1 }
 0x265   :  { %499 = vmatmul.mubr.f32.vlgmr.msra.gmra.mrb[2].mxu0 %v580_v2 }
 0x338   :  { %v500_v5 = vpop.f32.mrb[2].mxu0 }
 0x339   :  { %v321_v6 = vpop.f32.mrb[3].mxu0  ;;  %v337_v7 = vrot.slane %v500_v5, %v332_v4 }
 0x33a   :  { %v333_v8 = vrot.slane %v321_v6, %v332_v4 }
 0x33b   :  { %v339_v10 = vsub.f32 %v500_v5, %v337_v7 }
 0x33c   :  { %v338_v9 = vsub.f32 %v321_v6, %v333_v8 }
 0x33d   :  { %v341_v12 = vmul.f32 %v339_v10, %v339_v10 }
 0x33e   :  { %v340_v11 = vmul.f32 %v338_v9, %v338_v9 }
 0x340   :  { %342 = vadd.xlane.f32.xlu1 %v340_v11 }
 0x344   :  { %344 = vadd.xlane.f32.xlu1 %v341_v12 }
 0x3cd   :  { %v343_v13 = vpop.xlane.xlu1 %342 }
 0x3ce   :  { %v346_v15 = vsub.f32 0.0, %v343_v13 }
 0x3d0   :  { %v354_v18 = vrot.slane %v346_v15, %v353_v14 }
 0x3d1   :  { %v345_v16 = vpop.xlane.xlu1 %344 }
 0x3d2   :  { %v347_v17 = vsub.f32 0.0, %v345_v16 }
 0x3d4   :  { %v358_v19 = vrot.slane %v347_v17, %v353_v14 }
 0x3d6   :  { %v360_v20 = vsel %vm359_vm3, %v358_v19, %v354_v18 }
 0x3d7   :  { %363 = vst.msk [vmem:[#allocation7] sm:$0x3] %vm362_vm4, %v360_v20 }
 0x3d8   :  { %636 = shalt.err (!%p633_p6)
}
 0x3d9   :  { %s637_s24 = scalar_lea.hbm %s742_s4, 32 }
 0x3da   :  { %p638_p7 = scmp.ne.s32.totalorder %s742_s4, %s637_s24  ;;  %p641_p8 = scmp.lt.u32.totalorder %s637_s24, %s742_s4 }
 0x3dc   :  { %p643_p9 = pnand %p641_p8, %p638_p7 }
 0x3de   :  { %646 = shalt.err (!%p643_p9)
}
 0x3df   :  { %373 = dma.vmem_to_hbm [thread:$0]  %s371_s1, 32, %s742_s4, [#allocation4]  }
 0x3e0   :  { %651 = dma.done.wait [#allocation4], 32  }
 0x3e1   :  { %652 = vsyncadd [#allocation4], 4294967264 }
 0x3e2   :  { %377 = vsyncpa [#allocation3], 1 }
 0x3e3   :  { %378 = vsyncpa [#allocation6], 1 }
 0x3e4   :  { %379 = vsyncpa [#allocation4], 1 }

</bundles_post_ra>
